<compile_context>
chip_gen: v6e
topology: v6e:2x2x1
jax: 0.10.0
libtpu: 0.0.40
codegen_flags: <defaults>
</compile_context>

<pallas_src>
import functools
import math

import jax
import jax.numpy as jnp
from jax.experimental import pallas as pl
from jax.experimental.pallas import tpu as pltpu


def _self_attention_kernel(q_ref, k_ref, v_ref, bias_ref,
                           wq_ref, wk_ref, wv_ref, wfc_ref, bfc_ref,
                           out_ref,
                           qh_sc, m_sc, l_sc, acc_sc):
    # Per-step blocks (batch dim squeezed by BlockSpec):
    #   q_ref:   (H, TQ, D) bf16          k_ref/v_ref: (H, TK, D) bf16
    #   bias_ref:(TQ, TK)   bf16 additive mask bias (0 or -1e20)
    #   wq/wk/wv_ref: (D, D) bf16 (pre-transposed; softmax scale folded into wq)
    #   wfc_ref: (H, D, E) bf16 (= Wfc^T split per head)   bfc_ref: (1, E) f32
    # Scratch (persistent across the ki reduction axis):
    #   qh_sc (H, TQ, D) bf16; m_sc/l_sc (H, TQ, 1) f32; acc_sc (H, TQ, D) f32
    H, TQ, D = q_ref.shape
    _, TK, _ = k_ref.shape
    ki = pl.program_id(2)

    @pl.when(ki == 0)
    def _init():
        # Project q once per (n, q-tile): one (H*TQ, D) @ (D, D) MXU matmul.
        qh = jnp.dot(q_ref[...].reshape(H * TQ, D), wq_ref[...],
                     preferred_element_type=jnp.float32)
        qh_sc[...] = qh.reshape(H, TQ, D).astype(jnp.bfloat16)
        m_sc[...] = jnp.full(m_sc.shape, -jnp.inf, dtype=m_sc.dtype)
        l_sc[...] = jnp.zeros(l_sc.shape, dtype=l_sc.dtype)
        acc_sc[...] = jnp.zeros(acc_sc.shape, dtype=acc_sc.dtype)

    # Project the current k/v tile: single (H*TK, D) @ (D, D) matmuls.
    kh = jnp.dot(k_ref[...].reshape(H * TK, D), wk_ref[...],
                 preferred_element_type=jnp.float32).reshape(H, TK, D).astype(jnp.bfloat16)
    vh = jnp.dot(v_ref[...].reshape(H * TK, D), wv_ref[...],
                 preferred_element_type=jnp.float32).reshape(H, TK, D).astype(jnp.bfloat16)

    # Scores (H, TQ, TK) in f32; 1/sqrt(embed) already folded into Wq^T.
    s = jnp.einsum('hqd,hkd->hqk', qh_sc[...], kh,
                   preferred_element_type=jnp.float32)
    s = s + bias_ref[...].astype(jnp.float32)[None, :, :]

    # Flash-style online softmax update (f32 math).
    m_prev = m_sc[...]
    m_new = jnp.maximum(m_prev, jnp.max(s, axis=-1, keepdims=True))
    alpha = jnp.exp(m_prev - m_new)
    p = jnp.exp(s - m_new)
    l_sc[...] = alpha * l_sc[...] + jnp.sum(p, axis=-1, keepdims=True)
    acc_sc[...] = alpha * acc_sc[...] + jnp.einsum(
        'hqk,hkd->hqd', p.astype(jnp.bfloat16), vh,
        preferred_element_type=jnp.float32)
    m_sc[...] = m_new

    @pl.when(ki == pl.num_programs(2) - 1)
    def _finalize():
        o = (acc_sc[...] * pl.reciprocal(l_sc[...], approx=True)).astype(jnp.bfloat16)
        # fc_out folded per head: out = bias + sum_h O_h @ Wfc^T[h]
        # (unrolled 2D MXU matmuls accumulating into a single (TQ, E) f32 tile;
        #  no (H, TQ, E) intermediate).
        out = bfc_ref[...].astype(jnp.float32)           # (1, E), broadcasts on add
        for h in range(H):
            out = out + jnp.dot(o[h], wfc_ref[h],
                                preferred_element_type=jnp.float32)
        out_ref[...] = out.astype(out_ref.dtype)


def _pick_tile(n, cap, align):
    """Largest divisor of n that is <= cap and a multiple of `align`.

    Falls back to the full dim (no tiling) if none exists.
    TODO(synk): pad ragged sequence lengths instead of falling back.
    """
    if n <= cap:
        return n
    for t in range(cap, 0, -1):
        if n % t == 0 and t % align == 0:
            return t
    return n


def _padded_bytes(shape, dtype):
    """Rough VMEM footprint of one buffer with (8, 128) minor-tile padding."""
    itemsize = jnp.dtype(dtype).itemsize
    if len(shape) < 2:
        return max(int(math.prod(shape)) * itemsize, itemsize)
    lead = int(math.prod(shape[:-2])) if len(shape) > 2 else 1
    sub = -(-shape[-2] // 8) * 8
    lane = -(-shape[-1] // 128) * 128
    return lead * sub * lane * itemsize


def self_attention(values, keys, query, mask, params, *, heads,
                   q_tile_cap=256, k_tile_cap=512):
    """values/keys/query: (N, seq, embed) f32; mask: (N, q_len, k_len) (0 = masked)."""
    N, q_len, embed = query.shape
    _, k_len, _ = keys.shape
    head_dim = embed // heads
    assert head_dim * heads == embed, "embed must be divisible by heads"

    wq, wk, wv, wfc, bfc = params
    inv_sqrt_e = 1.0 / jnp.sqrt(jnp.float32(embed))

    # ---- host/XLA-side layout plumbing (cheap, fused by XLA) ----
    def to_heads(x, L):  # (N, L, E) -> (N, H, L, D), bf16 for the MXU
        return x.reshape(N, L, heads, head_dim).transpose(0, 2, 1, 3).astype(jnp.bfloat16)

    q_h = to_heads(query, q_len)
    k_h = to_heads(keys, k_len)
    v_h = to_heads(values, k_len)

    # Single (D, D) weights (NO per-head broadcast); softmax scale folded into Wq^T.
    wq_t = (wq.T * inv_sqrt_e).astype(jnp.bfloat16)
    wk_t = wk.T.astype(jnp.bfloat16)
    wv_t = wv.T.astype(jnp.bfloat16)
    wfc_t = wfc.T.reshape(heads, head_dim, embed).astype(jnp.bfloat16)   # (H, D, E)
    bfc2 = bfc.reshape(1, embed).astype(jnp.float32)

    # Compact additive mask bias (0 keep / -1e20 masked), computed once, bf16.
    bias = jnp.where(mask == 0, jnp.float32(-1e20), jnp.float32(0.0)).astype(jnp.bfloat16)
    bias = jnp.broadcast_to(bias, (N, q_len, k_len))

    tq = _pick_tile(q_len, q_tile_cap, 8)
    tk = _pick_tile(k_len, k_tile_cap, 128)
    grid = (N, q_len // tq, k_len // tk)

    # VMEM budget: double-buffered blocks + persistent scratch, with headroom.
    blk_bytes = (
        _padded_bytes((heads, tq, head_dim), jnp.bfloat16)          # q
        + 2 * _padded_bytes((heads, tk, head_dim), jnp.bfloat16)    # k, v
        + _padded_bytes((tq, tk), jnp.bfloat16)                     # mask bias
        + _padded_bytes((tq, embed), query.dtype)                   # out
        + 3 * _padded_bytes((head_dim, head_dim), jnp.bfloat16)     # wq/wk/wv
        + _padded_bytes((heads, head_dim, embed), jnp.bfloat16)     # wfc
        + _padded_bytes((1, embed), jnp.float32)                    # bfc
    )
    scratch_bytes = (
        _padded_bytes((heads, tq, head_dim), jnp.bfloat16)
        + 2 * _padded_bytes((heads, tq, 1), jnp.float32)
        + _padded_bytes((heads, tq, head_dim), jnp.float32)
    )
    vmem_limit = int(min(max(2 * blk_bytes + scratch_bytes + (4 << 20), 32 << 20), 64 << 20))

    flops = int(
        2 * N * heads * head_dim * head_dim * (q_len + 2 * k_len)   # q/k/v projections
        + 4 * N * heads * q_len * k_len * head_dim                  # QK^T + PV
        + 2 * N * q_len * embed * embed                             # fc_out
    )
    transcendentals = int(N * heads * q_len * (k_len + grid[2]))    # exp(s) + alpha per k tile
    bytes_accessed = int(
        q_h.size * 2
        + grid[1] * (k_h.size + v_h.size) * 2
        + bias.size * 2
        + N * q_len * embed * 4
        + 2 * (3 * head_dim * head_dim + heads * head_dim * embed) + 4 * embed
    )

    return pl.pallas_call(
        _self_attention_kernel,
        out_shape=jax.ShapeDtypeStruct((N, q_len, embed), query.dtype),
        grid_spec=pltpu.PrefetchScalarGridSpec(
            num_scalar_prefetch=0,
            grid=grid,
            in_specs=[
                pl.BlockSpec((pl.Squeezed(), heads, tq, head_dim),
                             lambda n, qi, ki: (n, 0, qi, 0)),                 # q
                pl.BlockSpec((pl.Squeezed(), heads, tk, head_dim),
                             lambda n, qi, ki: (n, 0, ki, 0)),                 # k
                pl.BlockSpec((pl.Squeezed(), heads, tk, head_dim),
                             lambda n, qi, ki: (n, 0, ki, 0)),                 # v
                pl.BlockSpec((pl.Squeezed(), tq, tk),
                             lambda n, qi, ki: (n, qi, ki)),                   # mask bias
                pl.BlockSpec((head_dim, head_dim), lambda n, qi, ki: (0, 0)),  # wq^T (scaled)
                pl.BlockSpec((head_dim, head_dim), lambda n, qi, ki: (0, 0)),  # wk^T
                pl.BlockSpec((head_dim, head_dim), lambda n, qi, ki: (0, 0)),  # wv^T
                pl.BlockSpec((heads, head_dim, embed),
                             lambda n, qi, ki: (0, 0, 0)),                     # wfc^T per head
                pl.BlockSpec((1, embed), lambda n, qi, ki: (0, 0)),            # fc bias
            ],
            out_specs=pl.BlockSpec((pl.Squeezed(), tq, embed),
                                   lambda n, qi, ki: (n, qi, 0)),
            scratch_shapes=[
                pltpu.VMEM((heads, tq, head_dim), jnp.bfloat16),   # projected q tile
                pltpu.VMEM((heads, tq, 1), jnp.float32),           # running max
                pltpu.VMEM((heads, tq, 1), jnp.float32),           # running denom
                pltpu.VMEM((heads, tq, head_dim), jnp.float32),    # running output acc
            ],
        ),
        compiler_params=pltpu.CompilerParams(
            dimension_semantics=("parallel", "parallel", "arbitrary"),
            vmem_limit_bytes=vmem_limit,
        ),
        cost_estimate=pl.CostEstimate(
            flops=flops, transcendentals=transcendentals, bytes_accessed=bytes_accessed),
    )(q_h, k_h, v_h, bias, wq_t, wk_t, wv_t, wfc_t, bfc2)


def _reference(values, keys, query, mask, params, *, heads):
    """Pure-JAX f32 reference mirroring the PyTorch forward."""
    wq, wk, wv, wfc, bfc = params
    N, q_len, embed = query.shape
    k_len = keys.shape[1]
    hd = embed // heads
    v = values.reshape(N, k_len, heads, hd) @ wv.T
    k = keys.reshape(N, k_len, heads, hd) @ wk.T
    q = query.reshape(N, q_len, heads, hd) @ wq.T
    energy = jnp.einsum("nqhd,nkhd->nhqk", q, k)
    energy = jnp.where(mask[:, None, :, :] == 0, -1e20, energy)
    attn = jax.nn.softmax(energy / jnp.sqrt(jnp.float32(embed)), axis=-1)
    out = jnp.einsum("nhql,nlhd->nqhd", attn, v).reshape(N, q_len, embed)
    return out @ wfc.T + bfc


if __name__ == "__main__":
    N, seq, embed, heads = 2, 8, 32, 4
    head_dim = embed // heads

    key = jax.random.PRNGKey(0)
    ks = jax.random.split(key, 9)
    values = jax.random.normal(ks[0], (N, seq, embed), jnp.float32)
    keys_in = jax.random.normal(ks[1], (N, seq, embed), jnp.float32)
    query = jax.random.normal(ks[2], (N, seq, embed), jnp.float32)

    # causal mask (N, q_len, k_len); 0 -> masked
    mask = jnp.tril(jnp.ones((seq, seq), jnp.float32))[None].repeat(N, axis=0)

    # nn.Linear-shaped weights: (out_features, in_features)
    s = 0.1
    wq = s * jax.random.normal(ks[3], (head_dim, head_dim), jnp.float32)
    wk = s * jax.random.normal(ks[4], (head_dim, head_dim), jnp.float32)
    wv = s * jax.random.normal(ks[5], (head_dim, head_dim), jnp.float32)
    wfc = s * jax.random.normal(ks[6], (embed, embed), jnp.float32)
    bfc = s * jax.random.normal(ks[7], (embed,), jnp.float32)
    params = (wq, wk, wv, wfc, bfc)

    attn_fn = jax.jit(functools.partial(self_attention, heads=heads))
    out = attn_fn(values, keys_in, query, mask, params)
    out = jax.block_until_ready(out)

    ref = _reference(values, keys_in, query, mask, params, heads=heads)
    assert out.shape == (N, seq, embed)
    # bf16 MXU operands + approx reciprocal -> loosened tolerance vs the f32 reference
    assert jnp.allclose(out, ref, atol=2e-2, rtol=2e-2), "mismatch vs reference"

    print("KERNEL_OK")
</pallas_src>

<mosaic_0001>
module attributes {stable_mosaic.version = 11 : i64} {
  func.func @_self_attention_kernel(%arg0: i32, %arg1: i32, %arg2: i32, %arg3: memref<1x4x8x8xbf16, #tpu.memory_space<vmem>>, %arg4: memref<1x4x8x8xbf16, #tpu.memory_space<vmem>>, %arg5: memref<1x4x8x8xbf16, #tpu.memory_space<vmem>>, %arg6: memref<1x8x8xbf16, #tpu.memory_space<vmem>>, %arg7: memref<8x8xbf16, #tpu.memory_space<vmem>>, %arg8: memref<8x8xbf16, #tpu.memory_space<vmem>>, %arg9: memref<8x8xbf16, #tpu.memory_space<vmem>>, %arg10: memref<4x8x32xbf16, #tpu.memory_space<vmem>>, %arg11: memref<1x32xf32, #tpu.memory_space<vmem>>, %arg12: memref<1x8x32xf32, #tpu.memory_space<vmem>>, %arg13: memref<4x8x8xbf16, #tpu.memory_space<vmem>>, %arg14: memref<4x8x1xf32, #tpu.memory_space<vmem>>, %arg15: memref<4x8x1xf32, #tpu.memory_space<vmem>>, %arg16: memref<4x8x8xf32, #tpu.memory_space<vmem>>) attributes {dimension_semantics = [#tpu.dimension_semantics<parallel>, #tpu.dimension_semantics<parallel>, #tpu.dimension_semantics<arbitrary>], iteration_bounds = array<i64: 2, 1, 1>, scalar_prefetch = 0 : i64, scratch_operands = 4 : i64, tpu.core_type = #tpu.core_type<tc>, window_params = [{transform_indices = @transform_0, window_bounds = array<i64: 1, 4, 8, 8>}, {transform_indices = @transform_1, window_bounds = array<i64: 1, 4, 8, 8>}, {transform_indices = @transform_2, window_bounds = array<i64: 1, 4, 8, 8>}, {transform_indices = @transform_3, window_bounds = array<i64: 1, 8, 8>}, {pipeline_mode = #tpu.pipeline_mode<synchronous>, transform_indices = @transform_4, window_bounds = array<i64: 8, 8>}, {pipeline_mode = #tpu.pipeline_mode<synchronous>, transform_indices = @transform_5, window_bounds = array<i64: 8, 8>}, {pipeline_mode = #tpu.pipeline_mode<synchronous>, transform_indices = @transform_6, window_bounds = array<i64: 8, 8>}, {pipeline_mode = #tpu.pipeline_mode<synchronous>, transform_indices = @transform_7, window_bounds = array<i64: 4, 8, 32>}, {pipeline_mode = #tpu.pipeline_mode<synchronous>, transform_indices = @transform_8, window_bounds = array<i64: 1, 32>}, {transform_indices = @transform_9, window_bounds = array<i64: 1, 8, 32>}]} {
    %c0_i32 = arith.constant 0 : i32
    %0 = arith.cmpi eq, %arg2, %c0_i32 : i32
    %1 = arith.extui %0 : i1 to i32
    %c0_i32_0 = arith.constant 0 : i32
    %2 = arith.cmpi ne, %1, %c0_i32_0 : i32
    scf.if %2 {
      %c0_43 = arith.constant 0 : index
      %c0_44 = arith.constant 0 : index
      %c0_45 = arith.constant 0 : index
      %c0_46 = arith.constant 0 : index
      %51 = vector.load %arg3[%c0_43, %c0_44, %c0_45, %c0_46] : memref<1x4x8x8xbf16, #tpu.memory_space<vmem>>, vector<1x4x8x8xbf16>
      %52 = vector.shape_cast %51 : vector<1x4x8x8xbf16> to vector<4x8x8xbf16>
      %53 = vector.shape_cast %52 : vector<4x8x8xbf16> to vector<32x8xbf16>
      %c0_47 = arith.constant 0 : index
      %c0_48 = arith.constant 0 : index
      %54 = vector.load %arg7[%c0_47, %c0_48] : memref<8x8xbf16, #tpu.memory_space<vmem>>, vector<8x8xbf16>
      %cst_49 = arith.constant dense<0.000000e+00> : vector<32x8xf32>
      %55 = tpu.matmul %53, %54, %cst_49 {dimension_numbers = #tpu.dot_dimension_numbers<[1], [0], [0], [1], [0, 0, 1, 1], [], []>} : vector<32x8xbf16>, vector<8x8xbf16>, vector<32x8xf32> -> vector<32x8xf32>
      %56 = vector.shape_cast %55 : vector<32x8xf32> to vector<4x8x8xf32>
      %57 = arith.truncf %56 : vector<4x8x8xf32> to vector<4x8x8xbf16>
      %c0_50 = arith.constant 0 : index
      %c0_51 = arith.constant 0 : index
      %c0_52 = arith.constant 0 : index
      %58 = vector.load %arg13[%c0_50, %c0_51, %c0_52] : memref<4x8x8xbf16, #tpu.memory_space<vmem>>, vector<4x8x8xbf16>
      tpu.vector_store %arg13[%c0_50, %c0_51, %c0_52], %57 {strides = array<i32>} : memref<4x8x8xbf16, #tpu.memory_space<vmem>>, vector<4x8x8xbf16>,
      %cst_53 = arith.constant 0xFF800000 : f32
      %59 = vector.broadcast %cst_53 : f32 to vector<4x8x1xf32>
      %c0_54 = arith.constant 0 : index
      %c0_55 = arith.constant 0 : index
      %c0_56 = arith.constant 0 : index
      %60 = vector.load %arg14[%c0_54, %c0_55, %c0_56] : memref<4x8x1xf32, #tpu.memory_space<vmem>>, vector<4x8x1xf32>
      tpu.vector_store %arg14[%c0_54, %c0_55, %c0_56], %59 {strides = array<i32>} : memref<4x8x1xf32, #tpu.memory_space<vmem>>, vector<4x8x1xf32>,
      %cst_57 = arith.constant 0.000000e+00 : f32
      %61 = vector.broadcast %cst_57 : f32 to vector<4x8x1xf32>
      %c0_58 = arith.constant 0 : index
      %c0_59 = arith.constant 0 : index
      %c0_60 = arith.constant 0 : index
      %62 = vector.load %arg15[%c0_58, %c0_59, %c0_60] : memref<4x8x1xf32, #tpu.memory_space<vmem>>, vector<4x8x1xf32>
      tpu.vector_store %arg15[%c0_58, %c0_59, %c0_60], %61 {strides = array<i32>} : memref<4x8x1xf32, #tpu.memory_space<vmem>>, vector<4x8x1xf32>,
      %cst_61 = arith.constant 0.000000e+00 : f32
      %63 = vector.broadcast %cst_61 : f32 to vector<4x8x8xf32>
      %c0_62 = arith.constant 0 : index
      %c0_63 = arith.constant 0 : index
      %c0_64 = arith.constant 0 : index
      %64 = vector.load %arg16[%c0_62, %c0_63, %c0_64] : memref<4x8x8xf32, #tpu.memory_space<vmem>>, vector<4x8x8xf32>
      tpu.vector_store %arg16[%c0_62, %c0_63, %c0_64], %63 {strides = array<i32>} : memref<4x8x8xf32, #tpu.memory_space<vmem>>, vector<4x8x8xf32>,
    } else {
    }
    %c0 = arith.constant 0 : index
    %c0_1 = arith.constant 0 : index
    %c0_2 = arith.constant 0 : index
    %c0_3 = arith.constant 0 : index
    %3 = vector.load %arg4[%c0, %c0_1, %c0_2, %c0_3] : memref<1x4x8x8xbf16, #tpu.memory_space<vmem>>, vector<1x4x8x8xbf16>
    %4 = vector.shape_cast %3 : vector<1x4x8x8xbf16> to vector<4x8x8xbf16>
    %5 = vector.shape_cast %4 : vector<4x8x8xbf16> to vector<32x8xbf16>
    %c0_4 = arith.constant 0 : index
    %c0_5 = arith.constant 0 : index
    %6 = vector.load %arg8[%c0_4, %c0_5] : memref<8x8xbf16, #tpu.memory_space<vmem>>, vector<8x8xbf16>
    %cst = arith.constant dense<0.000000e+00> : vector<32x8xf32>
    %7 = tpu.matmul %5, %6, %cst {dimension_numbers = #tpu.dot_dimension_numbers<[1], [0], [0], [1], [0, 0, 1, 1], [], []>} : vector<32x8xbf16>, vector<8x8xbf16>, vector<32x8xf32> -> vector<32x8xf32>
    %8 = vector.shape_cast %7 : vector<32x8xf32> to vector<4x8x8xf32>
    %9 = arith.truncf %8 : vector<4x8x8xf32> to vector<4x8x8xbf16>
    %c0_6 = arith.constant 0 : index
    %c0_7 = arith.constant 0 : index
    %c0_8 = arith.constant 0 : index
    %c0_9 = arith.constant 0 : index
    %10 = vector.load %arg5[%c0_6, %c0_7, %c0_8, %c0_9] : memref<1x4x8x8xbf16, #tpu.memory_space<vmem>>, vector<1x4x8x8xbf16>
    %11 = vector.shape_cast %10 : vector<1x4x8x8xbf16> to vector<4x8x8xbf16>
    %12 = vector.shape_cast %11 : vector<4x8x8xbf16> to vector<32x8xbf16>
    %c0_10 = arith.constant 0 : index
    %c0_11 = arith.constant 0 : index
    %13 = vector.load %arg9[%c0_10, %c0_11] : memref<8x8xbf16, #tpu.memory_space<vmem>>, vector<8x8xbf16>
    %cst_12 = arith.constant dense<0.000000e+00> : vector<32x8xf32>
    %14 = tpu.matmul %12, %13, %cst_12 {dimension_numbers = #tpu.dot_dimension_numbers<[1], [0], [0], [1], [0, 0, 1, 1], [], []>} : vector<32x8xbf16>, vector<8x8xbf16>, vector<32x8xf32> -> vector<32x8xf32>
    %15 = vector.shape_cast %14 : vector<32x8xf32> to vector<4x8x8xf32>
    %16 = arith.truncf %15 : vector<4x8x8xf32> to vector<4x8x8xbf16>
    %c0_13 = arith.constant 0 : index
    %c0_14 = arith.constant 0 : index
    %c0_15 = arith.constant 0 : index
    %17 = vector.load %arg13[%c0_13, %c0_14, %c0_15] : memref<4x8x8xbf16, #tpu.memory_space<vmem>>, vector<4x8x8xbf16>
    "tpu.trace_start"() <{level = 10 : i32, message = "hqd,hkd->hqk"}> : () -> ()
    %cst_16 = arith.constant dense<0.000000e+00> : vector<4x8x8xf32>
    %18 = tpu.matmul %17, %9, %cst_16 {dimension_numbers = #tpu.dot_dimension_numbers<[2], [2], [1], [1], [0, 0, 0, 1, 1, 1], [0], [0]>} : vector<4x8x8xbf16>, vector<4x8x8xbf16>, vector<4x8x8xf32> -> vector<4x8x8xf32>
    "tpu.trace_stop"() : () -> ()
    %c0_17 = arith.constant 0 : index
    %c0_18 = arith.constant 0 : index
    %c0_19 = arith.constant 0 : index
    %19 = vector.load %arg6[%c0_17, %c0_18, %c0_19] : memref<1x8x8xbf16, #tpu.memory_space<vmem>>, vector<1x8x8xbf16>
    %20 = vector.shape_cast %19 : vector<1x8x8xbf16> to vector<8x8xbf16>
    %21 = arith.extf %20 : vector<8x8xbf16> to vector<8x8xf32>
    %22 = vector.shape_cast %21 : vector<8x8xf32> to vector<1x8x8xf32>
    %23 = vector.broadcast %22 : vector<1x8x8xf32> to vector<4x8x8xf32>
    %24 = arith.addf %18, %23 : vector<4x8x8xf32>
    %c0_20 = arith.constant 0 : index
    %c0_21 = arith.constant 0 : index
    %c0_22 = arith.constant 0 : index
    %25 = vector.load %arg14[%c0_20, %c0_21, %c0_22] : memref<4x8x1xf32, #tpu.memory_space<vmem>>, vector<4x8x1xf32>
    %cst_23 = arith.constant dense<0xFF800000> : vector<4x8xf32>
    %26 = vector.multi_reduction <maximumf>, %24, %cst_23 [2] : vector<4x8x8xf32> to vector<4x8xf32>
    %27 = vector.shape_cast %26 : vector<4x8xf32> to vector<4x8x1xf32>
    %28 = arith.maximumf %25, %27 : vector<4x8x1xf32>
    %29 = arith.subf %25, %28 : vector<4x8x1xf32>
    %30 = math.exp %29 : vector<4x8x1xf32>
    %31 = vector.broadcast %28 : vector<4x8x1xf32> to vector<4x8x8xf32>
    %32 = arith.subf %24, %31 : vector<4x8x8xf32>
    %33 = math.exp %32 : vector<4x8x8xf32>
    %c0_24 = arith.constant 0 : index
    %c0_25 = arith.constant 0 : index
    %c0_26 = arith.constant 0 : index
    %34 = vector.load %arg15[%c0_24, %c0_25, %c0_26] : memref<4x8x1xf32, #tpu.memory_space<vmem>>, vector<4x8x1xf32>
    %35 = arith.mulf %30, %34 : vector<4x8x1xf32>
    %cst_27 = arith.constant dense<0.000000e+00> : vector<4x8xf32>
    %36 = vector.multi_reduction <add>, %33, %cst_27 [2] : vector<4x8x8xf32> to vector<4x8xf32>
    %37 = vector.shape_cast %36 : vector<4x8xf32> to vector<4x8x1xf32>
    %38 = arith.addf %35, %37 : vector<4x8x1xf32>
    %c0_28 = arith.constant 0 : index
    %c0_29 = arith.constant 0 : index
    %c0_30 = arith.constant 0 : index
    %39 = vector.load %arg15[%c0_28, %c0_29, %c0_30] : memref<4x8x1xf32, #tpu.memory_space<vmem>>, vector<4x8x1xf32>
    tpu.vector_store %arg15[%c0_28, %c0_29, %c0_30], %38 {strides = array<i32>} : memref<4x8x1xf32, #tpu.memory_space<vmem>>, vector<4x8x1xf32>,
    %c0_31 = arith.constant 0 : index
    %c0_32 = arith.constant 0 : index
    %c0_33 = arith.constant 0 : index
    %40 = vector.load %arg16[%c0_31, %c0_32, %c0_33] : memref<4x8x8xf32, #tpu.memory_space<vmem>>, vector<4x8x8xf32>
    %41 = vector.broadcast %30 : vector<4x8x1xf32> to vector<4x8x8xf32>
    %42 = arith.mulf %41, %40 : vector<4x8x8xf32>
    %43 = arith.truncf %33 : vector<4x8x8xf32> to vector<4x8x8xbf16>
    "tpu.trace_start"() <{level = 10 : i32, message = "hqk,hkd->hqd"}> : () -> ()
    %cst_34 = arith.constant dense<0.000000e+00> : vector<4x8x8xf32>
    %44 = tpu.matmul %43, %16, %cst_34 {dimension_numbers = #tpu.dot_dimension_numbers<[2], [1], [1], [2], [0, 0, 0, 1, 1, 2], [0], [0]>} : vector<4x8x8xbf16>, vector<4x8x8xbf16>, vector<4x8x8xf32> -> vector<4x8x8xf32>
    "tpu.trace_stop"() : () -> ()
    %45 = arith.addf %42, %44 : vector<4x8x8xf32>
    %c0_35 = arith.constant 0 : index
    %c0_36 = arith.constant 0 : index
    %c0_37 = arith.constant 0 : index
    %46 = vector.load %arg16[%c0_35, %c0_36, %c0_37] : memref<4x8x8xf32, #tpu.memory_space<vmem>>, vector<4x8x8xf32>
    tpu.vector_store %arg16[%c0_35, %c0_36, %c0_37], %45 {strides = array<i32>} : memref<4x8x8xf32, #tpu.memory_space<vmem>>, vector<4x8x8xf32>,
    %c0_38 = arith.constant 0 : index
    %c0_39 = arith.constant 0 : index
    %c0_40 = arith.constant 0 : index
    %47 = vector.load %arg14[%c0_38, %c0_39, %c0_40] : memref<4x8x1xf32, #tpu.memory_space<vmem>>, vector<4x8x1xf32>
    tpu.vector_store %arg14[%c0_38, %c0_39, %c0_40], %28 {strides = array<i32>} : memref<4x8x1xf32, #tpu.memory_space<vmem>>, vector<4x8x1xf32>,
    %c0_i32_41 = arith.constant 0 : i32
    %48 = arith.cmpi eq, %arg2, %c0_i32_41 : i32
    %49 = arith.extui %48 : i1 to i32
    %c0_i32_42 = arith.constant 0 : i32
    %50 = arith.cmpi ne, %49, %c0_i32_42 : i32
    scf.if %50 {
      %c0_43 = arith.constant 0 : index
      %c0_44 = arith.constant 0 : index
      %c0_45 = arith.constant 0 : index
      %51 = vector.load %arg16[%c0_43, %c0_44, %c0_45] : memref<4x8x8xf32, #tpu.memory_space<vmem>>, vector<4x8x8xf32>
      %c0_46 = arith.constant 0 : index
      %c0_47 = arith.constant 0 : index
      %c0_48 = arith.constant 0 : index
      %52 = vector.load %arg15[%c0_46, %c0_47, %c0_48] : memref<4x8x1xf32, #tpu.memory_space<vmem>>, vector<4x8x1xf32>
      %53 = tpu.reciprocal %52 {approx = true} : vector<4x8x1xf32> -> vector<4x8x1xf32>
      %54 = vector.broadcast %53 : vector<4x8x1xf32> to vector<4x8x8xf32>
      %55 = arith.mulf %51, %54 : vector<4x8x8xf32>
      %56 = arith.truncf %55 : vector<4x8x8xf32> to vector<4x8x8xbf16>
      %c0_49 = arith.constant 0 : index
      %c0_50 = arith.constant 0 : index
      %57 = vector.load %arg11[%c0_49, %c0_50] : memref<1x32xf32, #tpu.memory_space<vmem>>, vector<1x32xf32>
      %58 = vector.extract_strided_slice %56 {offsets = [0, 0, 0], sizes = [1, 8, 8], strides = [1, 1, 1]} : vector<4x8x8xbf16> to vector<1x8x8xbf16>
      %59 = vector.shape_cast %58 : vector<1x8x8xbf16> to vector<8x8xbf16>
      %c0_51 = arith.constant 0 : index
      %c0_52 = arith.constant 0 : index
      %c0_53 = arith.constant 0 : index
      %60 = vector.load %arg10[%c0_51, %c0_52, %c0_53] : memref<4x8x32xbf16, #tpu.memory_space<vmem>>, vector<1x8x32xbf16>
      %61 = vector.shape_cast %60 : vector<1x8x32xbf16> to vector<8x32xbf16>
      %cst_54 = arith.constant dense<0.000000e+00> : vector<8x32xf32>
      %62 = tpu.matmul %59, %61, %cst_54 {dimension_numbers = #tpu.dot_dimension_numbers<[1], [0], [0], [1], [0, 0, 1, 1], [], []>} : vector<8x8xbf16>, vector<8x32xbf16>, vector<8x32xf32> -> vector<8x32xf32>
      %63 = vector.broadcast %57 : vector<1x32xf32> to vector<8x32xf32>
      %64 = arith.addf %63, %62 : vector<8x32xf32>
      %65 = vector.extract_strided_slice %56 {offsets = [1, 0, 0], sizes = [1, 8, 8], strides = [1, 1, 1]} : vector<4x8x8xbf16> to vector<1x8x8xbf16>
      %66 = vector.shape_cast %65 : vector<1x8x8xbf16> to vector<8x8xbf16>
      %c1 = arith.constant 1 : index
      %c0_55 = arith.constant 0 : index
      %c0_56 = arith.constant 0 : index
      %67 = vector.load %arg10[%c1, %c0_55, %c0_56] : memref<4x8x32xbf16, #tpu.memory_space<vmem>>, vector<1x8x32xbf16>
      %68 = vector.shape_cast %67 : vector<1x8x32xbf16> to vector<8x32xbf16>
      %cst_57 = arith.constant dense<0.000000e+00> : vector<8x32xf32>
      %69 = tpu.matmul %66, %68, %cst_57 {dimension_numbers = #tpu.dot_dimension_numbers<[1], [0], [0], [1], [0, 0, 1, 1], [], []>} : vector<8x8xbf16>, vector<8x32xbf16>, vector<8x32xf32> -> vector<8x32xf32>
      %70 = arith.addf %64, %69 : vector<8x32xf32>
      %71 = vector.extract_strided_slice %56 {offsets = [2, 0, 0], sizes = [1, 8, 8], strides = [1, 1, 1]} : vector<4x8x8xbf16> to vector<1x8x8xbf16>
      %72 = vector.shape_cast %71 : vector<1x8x8xbf16> to vector<8x8xbf16>
      %c2 = arith.constant 2 : index
      %c0_58 = arith.constant 0 : index
      %c0_59 = arith.constant 0 : index
      %73 = vector.load %arg10[%c2, %c0_58, %c0_59] : memref<4x8x32xbf16, #tpu.memory_space<vmem>>, vector<1x8x32xbf16>
      %74 = vector.shape_cast %73 : vector<1x8x32xbf16> to vector<8x32xbf16>
      %cst_60 = arith.constant dense<0.000000e+00> : vector<8x32xf32>
      %75 = tpu.matmul %72, %74, %cst_60 {dimension_numbers = #tpu.dot_dimension_numbers<[1], [0], [0], [1], [0, 0, 1, 1], [], []>} : vector<8x8xbf16>, vector<8x32xbf16>, vector<8x32xf32> -> vector<8x32xf32>
      %76 = arith.addf %70, %75 : vector<8x32xf32>
      %77 = vector.extract_strided_slice %56 {offsets = [3, 0, 0], sizes = [1, 8, 8], strides = [1, 1, 1]} : vector<4x8x8xbf16> to vector<1x8x8xbf16>
      %78 = vector.shape_cast %77 : vector<1x8x8xbf16> to vector<8x8xbf16>
      %c3 = arith.constant 3 : index
      %c0_61 = arith.constant 0 : index
      %c0_62 = arith.constant 0 : index
      %79 = vector.load %arg10[%c3, %c0_61, %c0_62] : memref<4x8x32xbf16, #tpu.memory_space<vmem>>, vector<1x8x32xbf16>
      %80 = vector.shape_cast %79 : vector<1x8x32xbf16> to vector<8x32xbf16>
      %cst_63 = arith.constant dense<0.000000e+00> : vector<8x32xf32>
      %81 = tpu.matmul %78, %80, %cst_63 {dimension_numbers = #tpu.dot_dimension_numbers<[1], [0], [0], [1], [0, 0, 1, 1], [], []>} : vector<8x8xbf16>, vector<8x32xbf16>, vector<8x32xf32> -> vector<8x32xf32>
      %82 = arith.addf %76, %81 : vector<8x32xf32>
      %c0_64 = arith.constant 0 : index
      %c0_65 = arith.constant 0 : index
      %c0_66 = arith.constant 0 : index
      %83 = vector.load %arg12[%c0_64, %c0_65, %c0_66] : memref<1x8x32xf32, #tpu.memory_space<vmem>>, vector<1x8x32xf32>
      %84 = vector.shape_cast %83 : vector<1x8x32xf32> to vector<8x32xf32>
      %85 = vector.shape_cast %82 : vector<8x32xf32> to vector<1x8x32xf32>
      tpu.vector_store %arg12[%c0_64, %c0_65, %c0_66], %85 {strides = array<i32>} : memref<1x8x32xf32, #tpu.memory_space<vmem>>, vector<1x8x32xf32>,
    } else {
    }
    return
  }
  func.func @transform_0(%arg0: i32, %arg1: i32, %arg2: i32) -> (i32, i32, i32, i32) {
    %c0_i32 = arith.constant 0 : i32
    %c0_i32_0 = arith.constant 0 : i32
    %c0_i32_1 = arith.constant 0 : i32
    return %arg0, %c0_i32, %arg1, %c0_i32_0 : i32, i32, i32, i32
  }
  func.func @transform_1(%arg0: i32, %arg1: i32, %arg2: i32) -> (i32, i32, i32, i32) {
    %c0_i32 = arith.constant 0 : i32
    %c0_i32_0 = arith.constant 0 : i32
    %c0_i32_1 = arith.constant 0 : i32
    return %arg0, %c0_i32, %arg2, %c0_i32_0 : i32, i32, i32, i32
  }
  func.func @transform_2(%arg0: i32, %arg1: i32, %arg2: i32) -> (i32, i32, i32, i32) {
    %c0_i32 = arith.constant 0 : i32
    %c0_i32_0 = arith.constant 0 : i32
    %c0_i32_1 = arith.constant 0 : i32
    return %arg0, %c0_i32, %arg2, %c0_i32_0 : i32, i32, i32, i32
  }
  func.func @transform_3(%arg0: i32, %arg1: i32, %arg2: i32) -> (i32, i32, i32) {
    %c0_i32 = arith.constant 0 : i32
    return %arg0, %arg1, %arg2 : i32, i32, i32
  }
  func.func @transform_4(%arg0: i32, %arg1: i32, %arg2: i32) -> (i32, i32) {
    %c0_i32 = arith.constant 0 : i32
    %c0_i32_0 = arith.constant 0 : i32
    %c0_i32_1 = arith.constant 0 : i32
    return %c0_i32, %c0_i32_0 : i32, i32
  }
  func.func @transform_5(%arg0: i32, %arg1: i32, %arg2: i32) -> (i32, i32) {
    %c0_i32 = arith.constant 0 : i32
    %c0_i32_0 = arith.constant 0 : i32
    %c0_i32_1 = arith.constant 0 : i32
    return %c0_i32, %c0_i32_0 : i32, i32
  }
  func.func @transform_6(%arg0: i32, %arg1: i32, %arg2: i32) -> (i32, i32) {
    %c0_i32 = arith.constant 0 : i32
    %c0_i32_0 = arith.constant 0 : i32
    %c0_i32_1 = arith.constant 0 : i32
    return %c0_i32, %c0_i32_0 : i32, i32
  }
  func.func @transform_7(%arg0: i32, %arg1: i32, %arg2: i32) -> (i32, i32, i32) {
    %c0_i32 = arith.constant 0 : i32
    %c0_i32_0 = arith.constant 0 : i32
    %c0_i32_1 = arith.constant 0 : i32
    %c0_i32_2 = arith.constant 0 : i32
    return %c0_i32, %c0_i32_0, %c0_i32_1 : i32, i32, i32
  }
  func.func @transform_8(%arg0: i32, %arg1: i32, %arg2: i32) -> (i32, i32) {
    %c0_i32 = arith.constant 0 : i32
    %c0_i32_0 = arith.constant 0 : i32
    %c0_i32_1 = arith.constant 0 : i32
    return %c0_i32, %c0_i32_0 : i32, i32
  }
  func.func @transform_9(%arg0: i32, %arg1: i32, %arg2: i32) -> (i32, i32, i32) {
    %c0_i32 = arith.constant 0 : i32
    %c0_i32_0 = arith.constant 0 : i32
    return %arg0, %arg1, %c0_i32 : i32, i32, i32
  }
}

</mosaic_0001>

<bundles_post_ra>
// kernel: self_attention.1
= control target key start
LH: loop header
LB: loop body
LE: loop exit
PB: predicated region body
PF: predicated region fallthrough
CT: control target
= control target key end

     0   :  { %14 = vsyncpa [#allocation7], 0  ;;  %s2316_s0 = inlined_call_operand.vmem [shape: bf16[2,4,8,8], index: 0, kind: input, shape index: {}]   ;;  %s2317_s1 = inlined_call_operand.vmem [shape: bf16[2,4,8,8], index: 1, kind: input, shape index: {}]   ;;  %s2318_s2 = inlined_call_operand.vmem [shape: bf16[2,4,8,8], index: 2, kind: input, shape index: {}]   ;;  %s2319_s3 = inlined_call_operand.vmem [shape: bf16[2,8,8], index: 3, kind: input, shape index: {}]   ;;  %s2320_s4 = inlined_call_operand.vmem [shape: bf16[8,8], index: 4, kind: input, shape index: {}]   ;;  %s2321_s5 = inlined_call_operand.vmem [shape: bf16[8,8], index: 5, kind: input, shape index: {}]   ;;  %s2322_s6 = inlined_call_operand.vmem [shape: bf16[8,8], index: 6, kind: input, shape index: {}]   ;;  %s2323_s7 = inlined_call_operand.vmem [shape: bf16[4,8,32], index: 7, kind: input, shape index: {}]   ;;  %s2324_s8 = inlined_call_operand.vmem [shape: f32[1,32], index: 8, kind: input, shape index: {}]   ;;  %s2325_s9 = inlined_call_operand.hbm [shape: f32[2,8,32], index: 9, kind: output, shape index: {}]  }
   0x1   :  { %16 = vsyncpa [#allocation7 + $0x1], 0  ;;  %s2024_s30 = smov 0   ;;  %s2026_s10 = smov 0  }
   0x2   :  { %s2028_s11 = smov 0   ;;  %s2030_s12 = smov 0  }
   0x3   :  { %s2032_s13 = smov 0   ;;  %s2034_s14 = smov 0  }
   0x4 LB: > { %s1626_s15 = sadd.s32 4294967295, %s1967_s14   ;;  %s1627_s16 = sadd.s32 4294967294, %s1967_s14   ;;  %s1967_s14 = sphi %s2034_s14, %s22_s14   ;;  %s1963_s13 = sphi %s2032_s13, %s2332_s13   ;;  %s1959_s12 = sphi %s2030_s12, %s2331_s12   ;;  %s1955_s11 = sphi %s2028_s11, %s2330_s11   ;;  %s1951_s10 = sphi %s2026_s10, %s2329_s10   ;;  %s1947_s30 = sphi %s2024_s30, %s2328_s30  }
   0x5   : > { %s41_s17 = sadd.s32 1, %s1963_s13  ;;  %s269_s18 = sadd.s32 1, %s1955_s11 }
   0x6   : > { %p43_p0 = scmp.ge.s32.totalorder %s41_s17, 2  ;;  %p279_p1 = scmp.ne.s32.totalorder %s1955_s11, %s1951_s10 }
   0x7   : > { %p280_p2 = scmp.eq.s32.totalorder %s1626_s15, 1  ;;  %p285_p3 = scmp.ne.s32.totalorder %s1951_s10, %s1947_s30 }
   0x8   : > { %s2334_s17 = smov (%p43_p0, %s41_s17), 0  ;;  %p286_p5 = scmp.eq.s32.totalorder %s1627_s16, 1 }
   0x9   : > { %p2064_p4 = por %p280_p2, %p279_p1  ;;  %s264_s20 = ssub.s32 %s1963_s13, %s2334_s17 }
   0xa   : > { %p1630_p6 = scmp.ge.s32.totalorder %s1967_s14, 1  ;;  %p267_p7 = scmp.eq.s32.totalorder %s264_s20, 0 }
   0xb   : > { %p2071_p8 = por %p286_p5, %p285_p3  ;;  %p365_p9 = scmp.lt.s32.totalorder %s1967_s14, 3 }
   0xc   : > { %s2077_s22 = scalar_select %p267_p7, %s1955_s11, %s269_s18  }
   0xd   : > { %p366_p10 = pnand %p1630_p6, %p365_p9 }
   0xe   : > { %p430_p11 = scmp.lt.s32.totalorder (!%p366_p10), %s1959_s12, 1  ;;  %s1973_s18 = smov (!%p366_p10), [#allocation6]  }
   0xf   : > { %369 = sbr.rel (%p366_p10) target bundleno = 1222 (0x4c6), region = 56 }
  0x14   : > { %v473_v0 = vld [vmem:[%s2320_s4] sm:$0xf]  ;;  %vm491_vm0 = vcmask 1043456   ;;  %s2091_s27 = scalar_select %p430_p11, %s1959_s12, 1  ;;  %vm484_vm1 = vcmask 64512   ;;  %v1969_v12 = vmov 0.0  }
  0x15   : > { %v570_v1 = vld [vmem:[%s2321_s5] sm:$0xf]  ;;  %1797 = vmatprep.subr.msk.bf16.mxu0 %vm491_vm0, %v473_v0  ;;  %v493_v2 = vsel %vm491_vm0, %v473_v0, 0  ;;  %562 = vst.msk [vmem:[#allocation5] sm:$0xff] %vm484_vm1, %v1969_v12  ;;  %563 = vst.msk [vmem:[#allocation5 + $0x8] sm:$0xff] %vm484_vm1, %v1969_v12  ;;  %vm1970_vm2 = vmmov 0  }
  0x16   : > { %1798 = vmatprep.subr.msk.bf16.mxu1 %vm491_vm0, %v570_v1  ;;  %v590_v3 = vsel %vm491_vm0, %v570_v1, 0  ;;  %1708 = vmatpush3.bf16.msra.mxu0 %v493_v2  ;;  %s1671_s28 = sshll.u32 %s2091_s27, 4  ;;  %v649_v8 = vld [vmem:[%s2322_s6] sm:$0xf]  ;;  %564 = vst.msk [vmem:[#allocation5 + $0x10] sm:$0xff] %vm484_vm1, %v1969_v12  ;;  %565 = vst.msk [vmem:[#allocation5 + $0x18] sm:$0xff] %vm484_vm1, %v1969_v12 }
  0x17   : > { %1714 = vmatpush3.bf16.msra.mxu1 %v590_v3  ;;  %s437_s16 = scalar_lea.vmem %s2316_s0, %s1671_s28  ;;  %s445_s23 = scalar_lea.vmem %s2317_s1, %s1671_s28  ;;  %1799 = vmatprep.subr.msk.bf16.mxu0 %vm491_vm0, %v649_v8  ;;  %v667_v9 = vsel %vm491_vm0, %v649_v8, 0  ;;  %vm548_vm3 = vcmask 60416   ;;  %vm553_vm4 = vcmask 7168   ;;  %v1971_v45 = vmov -inf  }
  0x18   : > { %v1861_v4 = vld [vmem:[%s437_s16] sm:$0xff]   ;;  %v1863_v6 = vld [vmem:[%s437_s16 + $0x8] sm:$0xff]   ;;  %s453_s26 = scalar_lea.vmem %s2318_s2, %s1671_s28  ;;  %1725 = vmatprep.subr.bf16.mxu1 %v1969_v12  ;;  %554 = vst.msk [vmem:[#allocation3] sm:$0xff] %vm553_vm4, %v1971_v45  ;;  %555 = vst.msk [vmem:[#allocation3 + $0x8] sm:$0xff] %vm553_vm4, %v1971_v45  ;;  %s1638_s28 = sshll.u32 %s2091_s27, 2  ;;  %vm1478_vm5 = vcmask 261120  }
  0x19   : > { %v1862_v5 = vld [vmem:[%s445_s23] sm:$0xff]   ;;  %1709 = vmatprep.mubr.msk.bf16.mxu0 %vm484_vm1, %v1861_v4  ;;  %v1864_v7 = vld [vmem:[%s445_s23 + $0x8] sm:$0xff]   ;;  %556 = vst.msk [vmem:[#allocation3 + $0x10] sm:$0xff] %vm553_vm4, %v1971_v45  ;;  %557 = vst.msk [vmem:[#allocation3 + $0x18] sm:$0xff] %vm553_vm4, %v1971_v45  ;;  %s463_s20 = scalar_lea.vmem %s2319_s3, %s1638_s28  ;;  %s427_s16 = sand.u32 1, %s1951_s10  }
  0x1a   : > { %1715 = vmatprep.mubr.msk.bf16.mxu1 %vm484_vm1, %v1862_v5  ;;  %1710 = vmatmul.mubr.msk.bf16.vlgmr.msra.gmra.mxu0 %vm484_vm1, %v1863_v6  ;;  %v1865_v10 = vld [vmem:[%s453_s26] sm:$0xff]   ;;  %v1866_v11 = vld [vmem:[%s453_s26 + $0x8] sm:$0xff]   ;;  %558 = vst.msk [vmem:[#allocation4] sm:$0xff] %vm553_vm4, %v1969_v12  ;;  %559 = vst.msk [vmem:[#allocation4 + $0x8] sm:$0xff] %vm553_vm4, %v1969_v12  ;;  %v1972_v6 = vmov 0   ;;  %s1631_s27 = sshll.u32 %s427_s16, 3 }
  0x1b   : > { %1716 = vmatmul.mubr.msk.bf16.vlgmr.msra.gmra.mxu1 %vm484_vm1, %v1864_v7  ;;  %1720 = vmatpush3.bf16.msra.mxu0 %v667_v9  ;;  %560 = vst.msk [vmem:[#allocation4 + $0x10] sm:$0xff] %vm553_vm4, %v1969_v12  ;;  %561 = vst.msk [vmem:[#allocation4 + $0x18] sm:$0xff] %vm553_vm4, %v1969_v12  ;;  %v726_v46 = vld [vmem:[%s463_s20] sm:$0xf]  ;;  %s1668_s23 = sshll.u32 %s1959_s12, 7  ;;  %s429_s24 = scalar_lea.vmem [#allocation6], %s1631_s27 }
  0x1c   : > { %1721 = vmatprep.mubr.msk.bf16.mxu0 %vm484_vm1, %v1865_v10  ;;  %1731 = vmatprep.subr.bf16.mxu0 %v1969_v12  ;;  %v727_v47 = vunpack.c.l.bf16 %v726_v46  ;;  %s1495_s25 = sshll.u32 %s429_s24, 4  ;;  %s2270_s15 = scalar_lea.hbm %s2325_s9, %s1668_s23  ;;  %s2272_s25 = int_to_ptr.vmem [resolvable:$true] %s1495_s25 }
  0x1d   : > { %1727 = vmatprep.mubr.msk.bf16.mxu1 %vm1970_vm2, %v1969_v12  ;;  %1859 = vset.pattern.permute.xlu0 %v1972_v6  ;;  %s1481_s12 = scalar_lea.sflag [#allocation7], %s427_s16  ;;  %s1891_s28 = scalar_lea.vmem %s2272_s25, 128 }
  0x1e   : > { %1860 = vset.pattern.permute.xlu1 %v1972_v6  ;;  %p1892_p12 = scmp.ne.s32.totalorder %s2272_s25, %s1891_s28  ;;  %s1895_s20 = sshll.u32 %s1973_s18, 4  ;;  %s1896_s20 = int_to_ptr.vmem [resolvable:$false] %s1895_s20 }
  0x1f   : > { %v2180_v9 = vld [vmem:[#allocation3] sm:$0xff]  ;;  %s1897_s27 = scalar_lea.vmem %s1896_s20, 256  ;;  %p1898_p1 = scmp.lt.s32.totalorder %s2272_s25, %s1896_s20 }
  0x20   : > { %p1893_p13 = pnand %p1892_p12, %p2064_p4  ;;  %p1899_p2 = scmp.lt.s32.totalorder %s1897_s27, %s1891_s28 }
  0x22   : > { %1722 = vmatmul.mubr.msk.bf16.vlgmr.msra.gmra.mxu0 %vm484_vm1, %v1866_v11  ;;  %p1894_p0 = pneg %p1893_p13  ;;  %p1900_p3 = por %p1899_p2, %p1898_p1 }
  0x23   : > { %1733 = vmatprep.mubr.msk.bf16.mxu0 %vm1970_vm2, %v1969_v12 }
  0x24   : > { %p1901_p5 = pnand %p1900_p3, %p1894_p0 }
  0xda   : > { %v1711_v13 = vpop.f32.mrf.mxu0 }
  0xdb   : > { %v546_v14 = vpack.c.bf16 %v1711_v13, %v1711_v13  ;;  %v1717_v15 = vpop.f32.mrf.mxu1  ;;  %v913_v13 = vld [vmem:[#allocation3 + $0x8] sm:$0xff] }
  0xdc   : > { %v529_v16 = vpop.f32.mrf.mxu0  ;;  %v643_v28 = vpack.c.bf16 %v1717_v15, %v1717_v15 }
  0xdd   : > { %551 = vst.msk [vmem:[#allocation2 + $0x8] sm:$0xf] %vm548_vm3, %v546_v14  ;;  %v544_v17 = vpack.c.bf16 %v529_v16, %v529_v16  ;;  %v626_v18 = vpop.f32.mrf.mxu1 }
  0xde   : > { %v641_v19 = vpack.c.bf16 %v626_v18, %v626_v18  ;;  %v1712_v20 = vpop.f32.mrf.mxu0  ;;  %v824_v31 = vsel %vm484_vm1, %v643_v28, 0 }
  0xdf   : > { %549 = vst.msk [vmem:[#allocation2] sm:$0xf] %vm548_vm3, %v544_v17  ;;  %v547_v21 = vpack.c.bf16 %v1712_v20, %v1712_v20  ;;  %v1718_v22 = vpop.f32.mrf.mxu1  ;;  %v2190_v17 = vld [vmem:[#allocation3 + $0x10] sm:$0xff] }
  0xe0   : > { %v732_v23 = vsel %vm484_vm1, %v641_v19, 0  ;;  %v532_v24 = vpop.f32.mrf.mxu0  ;;  %v644_v32 = vpack.c.bf16 %v1718_v22, %v1718_v22 }
  0xe1   : > { %552 = vst.msk [vmem:[#allocation2 + $0xc] sm:$0xf] %vm548_vm3, %v547_v21  ;;  %v545_v25 = vpack.c.bf16 %v532_v24, %v532_v24  ;;  %v629_v26 = vpop.f32.mrf.mxu1  ;;  %1726 = vmatpush3.bf16.xpose.msra.mxu1 %v732_v23  ;;  %v2194_v21 = vld [vmem:[#allocation3 + $0x18] sm:$0xff] }
  0xe2   : > { %v642_v27 = vpack.c.bf16 %v629_v26, %v629_v26  ;;  %1737 = vmatprep.subr.bf16.mxu1 %v1969_v12  ;;  %v870_v34 = vsel %vm484_vm1, %v644_v32, 0  ;;  %v2152_v37 = vpop.f32.mrf.mxu0 }
  0xe3   : > { %550 = vst.msk [vmem:[#allocation2 + $0x4] sm:$0xf] %vm548_vm3, %v545_v25 }
  0xe4   : > { %v778_v29 = vsel %vm484_vm1, %v642_v27, 0  ;;  %v724_v35 = vld [vmem:[#allocation2 + $0x8] sm:$0xf]  ;;  %v703_v38 = vpop.f32.mrf.mxu0 }
  0xe5   : > { %1732 = vmatpush3.bf16.xpose.msra.mxu0 %v778_v29  ;;  %v718_v39 = vpack.c.bf16 %v703_v38, %v703_v38 }
  0xe6   : > { %v722_v30 = vld [vmem:[#allocation2] sm:$0xf]  ;;  %1743 = vmatprep.subr.bf16.mxu0 %v1969_v12  ;;  %v2154_v40 = vpop.f32.mrf.mxu0 }
  0xe7   : > { %v1041_v41 = vsel %vm491_vm0, %v718_v39, 0  ;;  %v720_v39 = vpack.c.bf16 %v2152_v37, %v2152_v37  ;;  %v721_v45 = vpack.c.bf16 %v2154_v40, %v2154_v40 }
  0xe8   : > { %1728 = vmatmul.mubr.msk.bf16.vlgmr.msra.gmra.mxu1 %vm484_vm1, %v722_v30  ;;  %v725_v36 = vld [vmem:[#allocation2 + $0xc] sm:$0xf]  ;;  %v706_v42 = vpop.f32.mrf.mxu0 }
  0xe9   : > { %1738 = vmatpush3.bf16.xpose.msra.mxu1 %v824_v31  ;;  %1739 = vmatprep.mubr.msk.bf16.mxu1 %vm1970_vm2, %v1969_v12  ;;  %v719_v43 = vpack.c.bf16 %v706_v42, %v706_v42 }
  0xea   : > { %v723_v33 = vld [vmem:[#allocation2 + $0x4] sm:$0xf]  ;;  %1749 = vmatprep.subr.bf16.mxu1 %v1969_v12 }
  0xeb   : > { %v1087_v44 = vsel %vm491_vm0, %v719_v43, 0 }
  0xec   : > { %1734 = vmatmul.mubr.msk.bf16.vlgmr.msra.gmra.mxu0 %vm484_vm1, %v723_v33 }
  0xed   : > { %1744 = vmatpush3.bf16.xpose.msra.mxu0 %v870_v34  ;;  %1745 = vmatprep.mubr.msk.bf16.mxu0 %vm1970_vm2, %v1969_v12 }
  0xee   : > { %1755 = vmatprep.subr.bf16.mxu0 %v1969_v12 }
  0xf0   : > { %1740 = vmatmul.mubr.msk.bf16.vlgmr.msra.gmra.mxu1 %vm484_vm1, %v724_v35 }
  0xf1   : > { %1751 = vmatprep.mubr.msk.bf16.mxu1 %vm1970_vm2, %v1969_v12  ;;  %1750 = vmatpush3.bf16.msra.mxu1 %v1041_v41 }
  0xf2   : > { %1761 = vmatprep.subr.bf16.mxu1 %v1969_v12 }
  0xf4   : > { %1746 = vmatmul.mubr.msk.bf16.vlgmr.msra.gmra.mxu0 %vm484_vm1, %v725_v36 }
  0xf5   : > { %1757 = vmatprep.mubr.msk.bf16.mxu0 %vm1970_vm2, %v1969_v12  ;;  %1756 = vmatpush3.bf16.msra.mxu0 %v1087_v44  ;;  %v1133_v44 = vsel %vm491_vm0, %v720_v39, 0 }
  0xf6   : > { %1767 = vmatprep.subr.bf16.mxu0 %v1969_v12 }
 0x1a8   : > { %v768_v48 = vpop.f32.mrf.mxu1 }
 0x1a9   : > { %v769_v49 = vadd.f32 %v768_v48, %v727_v47  ;;  %v1179_v48 = vsel %vm491_vm0, %v721_v45, 0 }
 0x1aa   : > { %v1729_v50 = vpop.f32.mrf.mxu1 }
 0x1ab   : > { %v916_v51 = vsel %vm484_vm1, %v769_v49, -inf }
 0x1ac   : > { %917 = vmax.xlane.f32.xlu0 %v916_v51  ;;  %v771_v52 = vpop.f32.mrf.mxu1  ;;  %v814_v53 = vpop.f32.mrf.mxu0 }
 0x1ad   : > { %v815_v54 = vadd.f32 %v814_v53, %v727_v47 }
 0x1ae   : > { %v1730_v55 = vpop.f32.mrf.mxu1  ;;  %v1735_v56 = vpop.f32.mrf.mxu0 }
 0x1af   : > { %v919_v57 = vsel %vm484_vm1, %v815_v54, -inf }
 0x1b0   : > { %v860_v58 = vpop.f32.mrf.mxu1  ;;  %920 = vmax.xlane.f32.xlu0 %v919_v57  ;;  %v817_v59 = vpop.f32.mrf.mxu0 }
 0x1b1   : > { %v861_v60 = vadd.f32 %v860_v58, %v727_v47 }
 0x1b2   : > { %v1736_v61 = vpop.f32.mrf.mxu0  ;;  %v1741_v62 = vpop.f32.mrf.mxu1 }
 0x1b3   : > { %v922_v63 = vsel %vm484_vm1, %v861_v60, -inf  ;;  %v976_v62 = vld [vmem:[#allocation4] sm:$0xff] }
 0x1b4   : > { %923 = vmax.xlane.f32.xlu1 %v922_v63  ;;  %v863_v0 = vpop.f32.mrf.mxu1  ;;  %v906_v1 = vpop.f32.mrf.mxu0 }
 0x1b5   : > { %v907_v2 = vadd.f32 %v906_v1, %v727_v47  ;;  %v977_v1 = vld [vmem:[#allocation4 + $0x8] sm:$0xff] }
 0x1b6   : > { %v1742_v3 = vpop.f32.mrf.mxu1  ;;  %v1747_v4 = vpop.f32.mrf.mxu0 }
 0x1b7   : > { %v925_v5 = vsel %vm484_vm1, %v907_v2, -inf }
 0x1b8   : > { %926 = vmax.xlane.f32.xlu1 %v925_v5  ;;  %v909_v7 = vpop.f32.mrf.mxu0  ;;  %v978_v5 = vld [vmem:[#allocation4 + $0x10] sm:$0xff] }
 0x1ba   : > { %v1748_v8 = vpop.f32.mrf.mxu0 }
 0x235   : > { %v918_v10 = vpop.xlane.xlu0 %917 }
 0x236   : > { %v2183_v11 = vmax.f32 %v2180_v9, %v918_v10 }
 0x238   : > { %v932_v14 = vsub.f32 %v2180_v9, %v2183_v11  ;;  %1229 = vst.msk [vmem:[#allocation3] sm:$0xff] %vm553_vm4, %v2183_v11  ;;  %946 = vperm.xlu0 %1859, %v2183_v11   ;;  %v979_v9 = vld [vmem:[#allocation4 + $0x18] sm:$0xff] }
 0x239   : > { %v921_v15 = vpop.xlane.xlu0 %920 }
 0x23a   : > { %v929_v16 = vmax.f32 %v913_v13, %v921_v15  ;;  %v936_v53 = vmul.f32 1.442695, %v932_v14 }
 0x23c   : > { %v933_v18 = vsub.f32 %v913_v13, %v929_v16  ;;  %1230 = vst.msk [vmem:[#allocation3 + $0x8] sm:$0xff] %vm553_vm4, %v929_v16  ;;  %951 = vperm.xlu1 %1860, %v929_v16  }
 0x23d   : > { %v924_v19 = vpop.xlane.xlu1 %923 }
 0x23e   : > { %v930_v20 = vmax.f32 %v2190_v17, %v924_v19  ;;  %v938_v51 = vmul.f32 1.442695, %v933_v18  ;;  %v1277_v18 = vld [vmem:[%s2323_s7] sm:$0xf] }
 0x240   : > { %v934_v22 = vsub.f32 %v2190_v17, %v930_v20  ;;  %1231 = vst.msk [vmem:[#allocation3 + $0x10] sm:$0xff] %vm553_vm4, %v930_v20  ;;  %956 = vperm.xlu1 %1860, %v930_v20   ;;  %v1282_v20 = vsel %vm491_vm0, %v1277_v18, 0  ;;  %v1660_v18 = vld [vmem:[%s2324_s8] ss:$0 sm:$0xff] }
 0x241   : > { %v927_v23 = vpop.xlane.xlu1 %926 }
 0x242   : > { %v931_v24 = vmax.f32 %v2194_v21, %v927_v23  ;;  %v940_v56 = vmul.f32 1.442695, %v934_v22 }
 0x244   : > { %v935_v25 = vsub.f32 %v2194_v21, %v931_v24  ;;  %1232 = vst.msk [vmem:[#allocation3 + $0x18] sm:$0xff] %vm553_vm4, %v931_v24  ;;  %961 = vperm.xlu1 %1860, %v931_v24   ;;  %v1661_v21 = vld [vmem:[%s2323_s7 + $0x4] sm:$0xf] }
 0x245   : > { %v1337_v23 = vsel %vm491_vm0, %v1661_v21, 0 }
 0x246   : > { %v942_v57 = vmul.f32 1.442695, %v935_v25 }
 0x2b3   : > { %v947_v26 = vpop.permute.xlu0 %946 }
 0x2b4   : > { %v964_v27 = vsub.f32 %v769_v49, %v947_v26 }
 0x2b6   : > { %v968_v28 = vmul.f32 1.442695, %v964_v27 }
 0x2b7   : > { %v952_v29 = vpop.permute.xlu1 %951 }
 0x2b8   : > { %1867 = vpow2.f32 %v968_v28  ;;  %v965_v30 = vsub.f32 %v815_v54, %v952_v29  ;;  %v1005_v28 = vld [vmem:[#allocation5] sm:$0xff] }
 0x2ba   : > { %v970_v31 = vmul.f32 1.442695, %v965_v30  ;;  %v1006_v30 = vld [vmem:[#allocation5 + $0x8] sm:$0xff] }
 0x2bb   : > { %v957_v32 = vpop.permute.xlu1 %956 }
 0x2bc   : > { %1869 = vpow2.f32 %v970_v31  ;;  %v966_v33 = vsub.f32 %v861_v60, %v957_v32 }
 0x2be   : > { %v972_v34 = vmul.f32 1.442695, %v966_v33 }
 0x2bf   : > { %v962_v35 = vpop.permute.xlu1 %961 }
 0x2c0   : > { %1871 = vpow2.f32 %v972_v34  ;;  %v967_v36 = vsub.f32 %v907_v2, %v962_v35 }
 0x2c2   : > { %v974_v38 = vmul.f32 1.442695, %v967_v36 }
 0x2c4   : > { %1873 = vpow2.f32 %v974_v38  ;;  %v1007_v38 = vld [vmem:[#allocation5 + $0x10] sm:$0xff] }
 0x2c5   : > { %v1868_v41 = vpop.eup %1867  ;;  %1875 = vpow2.f32 %v938_v51 }
 0x2c6   : > { %v984_v42 = vsel %vm484_vm1, %v1868_v41, 0.0  ;;  %v1033_v43 = vpack.c.bf16 %v1868_v41, %v1868_v41  ;;  %1877 = vpow2.f32 %v936_v53 }
 0x2c7   : > { %985 = vadd.xlane.f32.xlu1 %v984_v42  ;;  %1879 = vpow2.f32 %v940_v56 }
 0x2c8   : > { %1752 = vmatmul.mubr.msk.bf16.vlgmr.msra.gmra.mxu1 %vm484_vm1, %v1033_v43  ;;  %1881 = vpow2.f32 %v942_v57 }
 0x2c9   : > { %v1870_v46 = vpop.eup %1869  ;;  %1762 = vmatpush3.bf16.msra.mxu1 %v1133_v44  ;;  %1763 = vmatprep.mubr.msk.bf16.mxu1 %vm1970_vm2, %v1969_v12 }
 0x2ca   : > { %v987_v37 = vsel %vm484_vm1, %v1870_v46, 0.0  ;;  %v1034_v47 = vpack.c.bf16 %v1870_v46, %v1870_v46  ;;  %1773 = vmatprep.subr.bf16.mxu1 %v1969_v12 }
 0x2cb   : > { %988 = vadd.xlane.f32.xlu0 %v987_v37  ;;  %v1008_v37 = vld [vmem:[#allocation5 + $0x18] sm:$0xff] }
 0x2cc   : > { %1758 = vmatmul.mubr.msk.bf16.vlgmr.msra.gmra.mxu0 %vm484_vm1, %v1034_v47 }
 0x2cd   : > { %v1872_v49 = vpop.eup %1871  ;;  %1768 = vmatpush3.bf16.msra.mxu0 %v1179_v48  ;;  %1769 = vmatprep.mubr.msk.bf16.mxu0 %vm1970_vm2, %v1969_v12 }
 0x2ce   : > { %v990_v40 = vsel %vm484_vm1, %v1872_v49, 0.0  ;;  %v1035_v50 = vpack.c.bf16 %v1872_v49, %v1872_v49  ;;  %1779 = vmatprep.subr.bf16.mxu0 %v1969_v12 }
 0x2cf   : > { %991 = vadd.xlane.f32.xlu1 %v990_v40 }
 0x2d0   : > { %1764 = vmatmul.mubr.msk.bf16.vlgmr.msra.gmra.mxu1 %vm484_vm1, %v1035_v50 }
 0x2d1   : > { %v1874_v52 = vpop.eup %1873  ;;  %1775 = vmatprep.mubr.msk.bf16.mxu1 %vm1970_vm2, %v1969_v12  ;;  %1774 = vmatpush3.bf16.msra.mxu1 %v1282_v20 }
 0x2d2   : > { %v993_v54 = vsel %vm484_vm1, %v1874_v52, 0.0  ;;  %v1036_v55 = vpack.c.bf16 %v1874_v52, %v1874_v52  ;;  %v1876_v58 = vpop.eup %1875  ;;  %1785 = vmatprep.subr.bf16.mxu1 %v1969_v12 }
 0x2d3   : > { %994 = vadd.xlane.f32.xlu1 %v993_v54  ;;  %v1878_v59 = vpop.eup %1877  ;;  %v981_v3 = vmul.f32 %v1876_v58, %v977_v1 }
 0x2d4   : > { %1770 = vmatmul.mubr.msk.bf16.vlgmr.msra.gmra.mxu0 %vm484_vm1, %v1036_v55  ;;  %v1880_v60 = vpop.eup %1879  ;;  %v980_v63 = vmul.f32 %v1878_v59, %v976_v62 }
 0x2d5   : > { %1781 = vmatprep.mubr.msk.bf16.mxu0 %vm1970_vm2, %v1969_v12  ;;  %v1882_v61 = vpop.eup %1881  ;;  %v982_v7 = vmul.f32 %v1880_v60, %v978_v5  ;;  %1780 = vmatpush3.bf16.msra.mxu0 %v1337_v23 }
 0x2d6   : > { %v983_v13 = vmul.f32 %v1882_v61, %v979_v9  ;;  %1791 = vmatprep.subr.bf16.mxu0 %v1969_v12 }
 0x2e1   : > { %1016 = vperm.xlu0 %1859, %v1876_v58  }
 0x2e4   : > { %1011 = vperm.xlu1 %1860, %v1878_v59  }
 0x2e8   : > { %1021 = vperm.xlu1 %1860, %v1880_v60  }
 0x2ec   : > { %1026 = vperm.xlu1 %1860, %v1882_v61   ;;  %v1663_v61 = vld [vmem:[%s2323_s7 + $0x8] sm:$0xf] }
 0x350   : > { %v986_v0 = vpop.xlane.xlu1 %985 }
 0x351   : > { %v996_v2 = vadd.f32 %v986_v0, %v980_v63  ;;  %v1386_v0 = vsel %vm491_vm0, %v1663_v61, 0 }
 0x353   : > { %1001 = vst.msk [vmem:[#allocation4] sm:$0xff] %vm553_vm4, %v996_v2 }
 0x354   : > { %v989_v4 = vpop.xlane.xlu0 %988 }
 0x355   : > { %v997_v6 = vadd.f32 %v989_v4, %v981_v3  ;;  %v1665_v3 = vld [vmem:[%s2323_s7 + $0xc] sm:$0xf] }
 0x357   : > { %1002 = vst.msk [vmem:[#allocation4 + $0x8] sm:$0xff] %vm553_vm4, %v997_v6  ;;  %v1435_v6 = vsel %vm491_vm0, %v1665_v3, 0 }
 0x358   : > { %v992_v8 = vpop.xlane.xlu1 %991 }
 0x359   : > { %v998_v10 = vadd.f32 %v992_v8, %v982_v7 }
 0x35a   : > { %v1240_v11 = vld [vmem:[#allocation4] sm:$0xff] }
 0x35b   : > { %1003 = vst.msk [vmem:[#allocation4 + $0x10] sm:$0xff] %vm553_vm4, %v998_v10  ;;  %1883 = vrcp.f32 %v1240_v11 }
 0x35c   : > { %v995_v14 = vpop.xlane.xlu1 %994  ;;  %v1017_v31 = vpop.permute.xlu0 %1016 }
 0x35d   : > { %v999_v15 = vadd.f32 %v995_v14, %v983_v13  ;;  %v1030_v36 = vmul.f32 %v1017_v31, %v1006_v30 }
 0x35e   : > { %v1241_v16 = vld [vmem:[#allocation4 + $0x8] sm:$0xff] }
 0x35f   : > { %1004 = vst.msk [vmem:[#allocation4 + $0x18] sm:$0xff] %vm553_vm4, %v999_v15  ;;  %1885 = vrcp.f32 %v1241_v16 }
 0x360   : > { %v1012_v27 = vpop.permute.xlu1 %1011 }
 0x361   : > { %v1029_v29 = vmul.f32 %v1012_v27, %v1005_v28 }
 0x362   : > { %v1242_v17 = vld [vmem:[#allocation4 + $0x10] sm:$0xff] }
 0x363   : > { %1887 = vrcp.f32 %v1242_v17 }
 0x364   : > { %v1022_v33 = vpop.permute.xlu1 %1021 }
 0x365   : > { %v1031_v45 = vmul.f32 %v1022_v33, %v1007_v38 }
 0x366   : > { %v1243_v19 = vld [vmem:[#allocation4 + $0x18] sm:$0xff] }
 0x367   : > { %1889 = vrcp.f32 %v1243_v19 }
 0x368   : > { %v1884_v22 = vpop.eup %1883  ;;  %v1027_v46 = vpop.permute.xlu1 %1026 }
 0x369   : > { %1250 = vperm.xlu1 %1860, %v1884_v22   ;;  %v1032_v51 = vmul.f32 %v1027_v46, %v1008_v37 }
 0x36c   : > { %v1886_v24 = vpop.eup %1885 }
 0x36d   : > { %1255 = vperm.xlu0 %1859, %v1886_v24  }
 0x370   : > { %v1888_v25 = vpop.eup %1887 }
 0x371   : > { %1260 = vperm.xlu1 %1860, %v1888_v25  }
 0x374   : > { %v1890_v26 = vpop.eup %1889 }
 0x375   : > { %1265 = vperm.xlu0 %1859, %v1890_v26  }
 0x388   : > { %v1077_v32 = vpop.f32.mrf.mxu1 }
 0x389   : > { %v1221_v34 = vadd.f32 %v1077_v32, %v1029_v29 }
 0x38a   : > { %v1753_v35 = vpop.f32.mrf.mxu1 }
 0x38b   : > { %1225 = vst.msk [vmem:[#allocation5] sm:$0xff] %vm484_vm1, %v1221_v34 }
 0x38c   : > { %v1080_v39 = vpop.f32.mrf.mxu1  ;;  %v1123_v41 = vpop.f32.mrf.mxu0 }
 0x38d   : > { %v1222_v42 = vadd.f32 %v1123_v41, %v1030_v36 }
 0x38e   : > { %v1754_v43 = vpop.f32.mrf.mxu1  ;;  %v1759_v44 = vpop.f32.mrf.mxu0 }
 0x38f   : > { %1226 = vst.msk [vmem:[#allocation5 + $0x8] sm:$0xff] %vm484_vm1, %v1222_v42 }
 0x390   : > { %v1126_v47 = vpop.f32.mrf.mxu0  ;;  %v1169_v48 = vpop.f32.mrf.mxu1 }
 0x391   : > { %v1223_v49 = vadd.f32 %v1169_v48, %v1031_v45 }
 0x392   : > { %v1760_v40 = vpop.f32.mrf.mxu0  ;;  %v1765_v50 = vpop.f32.mrf.mxu1  ;;  %v1236_v59 = vld [vmem:[#allocation5] sm:$0xff] }
 0x393   : > { %1227 = vst.msk [vmem:[#allocation5 + $0x10] sm:$0xff] %vm484_vm1, %v1223_v49 }
 0x394   : > { %v1172_v52 = vpop.f32.mrf.mxu1  ;;  %v1215_v53 = vpop.f32.mrf.mxu0 }
 0x395   : > { %v1224_v54 = vadd.f32 %v1215_v53, %v1032_v51 }
 0x396   : > { %v1766_v55 = vpop.f32.mrf.mxu1  ;;  %v1771_v56 = vpop.f32.mrf.mxu0  ;;  %v1237_v2 = vld [vmem:[#allocation5 + $0x8] sm:$0xff] }
 0x397   : > { %1228 = vst.msk [vmem:[#allocation5 + $0x18] sm:$0xff] %vm484_vm1, %v1224_v54 }
 0x398   : > { %v1218_v57 = vpop.f32.mrf.mxu0 }
 0x39a   : > { %v1772_v58 = vpop.f32.mrf.mxu0  ;;  %v1238_v7 = vld [vmem:[#allocation5 + $0x10] sm:$0xff] }
 0x39e   : > { %v1239_v13 = vld [vmem:[#allocation5 + $0x18] sm:$0xff] }
 0x3e4   : > { %v1251_v60 = vpop.permute.xlu1 %1250 }
 0x3e5   : > { %v1268_v62 = vmul.f32 %v1251_v60, %v1236_v59 }
 0x3e7   : > { %v1272_v63 = vpack.c.bf16 %v1268_v62, %v1268_v62 }
 0x3e8   : > { %v1256_v1 = vpop.permute.xlu0 %1255 }
 0x3e9   : > { %v1269_v4 = vmul.f32 %v1256_v1, %v1237_v2  ;;  %1776 = vmatmul.mubr.msk.bf16.vlgmr.msra.gmra.mxu1 %vm484_vm1, %v1272_v63 }
 0x3ea   : > { %1786 = vmatpush3.bf16.msra.mxu1 %v1386_v0  ;;  %1787 = vmatprep.mubr.msk.bf16.mxu1 %vm1970_vm2, %v1969_v12 }
 0x3eb   : > { %v1273_v5 = vpack.c.bf16 %v1269_v4, %v1269_v4 }
 0x3ec   : > { %v1261_v8 = vpop.permute.xlu1 %1260 }
 0x3ed   : > { %v1270_v9 = vmul.f32 %v1261_v8, %v1238_v7  ;;  %1782 = vmatmul.mubr.msk.bf16.vlgmr.msra.gmra.mxu0 %vm484_vm1, %v1273_v5 }
 0x3ee   : > { %1792 = vmatpush3.bf16.msra.mxu0 %v1435_v6  ;;  %1793 = vmatprep.mubr.msk.bf16.mxu0 %vm1970_vm2, %v1969_v12 }
 0x3ef   : > { %v1274_v10 = vpack.c.bf16 %v1270_v9, %v1270_v9 }
 0x3f0   : > { %v1266_v11 = vpop.permute.xlu0 %1265 }
 0x3f1   : > { %v1271_v14 = vmul.f32 %v1266_v11, %v1239_v13  ;;  %1788 = vmatmul.mubr.msk.bf16.vlgmr.msra.gmra.mxu1 %vm484_vm1, %v1274_v10 }
 0x3f3   : > { %v1275_v15 = vpack.c.bf16 %v1271_v14, %v1271_v14 }
 0x3f5   : > { %1794 = vmatmul.mubr.msk.bf16.vlgmr.msra.gmra.mxu0 %vm484_vm1, %v1275_v15 }
 0x4a9   : > { %v1318_v16 = vpop.f32.mrf.mxu1 }
 0x4aa   : > { %v1330_v22 = vadd.f32 %v1660_v18, %v1318_v16 }
 0x4ab   : > { %v1777_v17 = vpop.f32.mrf.mxu1 }
 0x4ad   : > { %v1321_v19 = vpop.f32.mrf.mxu1  ;;  %v1373_v20 = vpop.f32.mrf.mxu0 }
 0x4ae   : > { %v1379_v25 = vadd.f32 %v1373_v20, %v1330_v22 }
 0x4af   : > { %v1778_v12 = vpop.f32.mrf.mxu1  ;;  %v1783_v21 = vpop.f32.mrf.mxu0 }
 0x4b1   : > { %v1376_v23 = vpop.f32.mrf.mxu0  ;;  %v1422_v24 = vpop.f32.mrf.mxu1 }
 0x4b2   : > { %v1428_v28 = vadd.f32 %v1422_v24, %v1379_v25 }
 0x4b3   : > { %v1784_v26 = vpop.f32.mrf.mxu0  ;;  %v1789_v27 = vpop.f32.mrf.mxu1 }
 0x4b5   : > { %v1425_v29 = vpop.f32.mrf.mxu1  ;;  %v1471_v30 = vpop.f32.mrf.mxu0 }
 0x4b6   : > { %v1477_v31 = vadd.f32 %v1471_v30, %v1428_v28 }
 0x4b7   : > { %v1790_v32 = vpop.f32.mrf.mxu1  ;;  %v1795_v33 = vpop.f32.mrf.mxu0 }
 0x4b8   : > { %1479 = vst.msk [vmem:[%s429_s24] sm:$0xff] %vm1478_vm5, %v1477_v31 }
 0x4b9   : > { %v1474_v34 = vpop.f32.mrf.mxu0 }
 0x4ba   : > { %1904 = shalt.err (!%p1901_p5)
}
 0x4bb   : > { %s1905_s23 = scalar_lea.hbm %s2270_s15, 128  ;;  %s1909_s26 = scalar_lea.hbm %s2325_s9, 256 }
 0x4bc   : > { %p1906_p6 = scmp.ne.s32.totalorder %s2270_s15, %s1905_s23  ;;  %p1910_p10 = scmp.lt.s32.totalorder %s2270_s15, %s2325_s9 }
 0x4bd   : > { %p1911_p11 = scmp.lt.s32.totalorder %s1909_s26, %s1905_s23 }
 0x4be   : > { %p1907_p7 = pnand %p1906_p6, %p2064_p4 }
 0x4bf   : > { %p1912_p12 = por %p1911_p11, %p1910_p10 }
 0x4c0   : > { %p1908_p9 = pneg %p1907_p7 }
 0x4c2   : > { %p1913_p13 = pnand %p1912_p12, %p1908_p9 }
 0x4c4   : > { %1916 = shalt.err (!%p1913_p13)
}
 0x4c5   : > { %1800 = dma.vmem_to_hbm [thread:$0]  (%p2064_p4), %s2272_s25, 128, %s2270_s15, %s1481_s12   ;;  %v1796_v35 = vpop.f32.mrf.mxu0 }
 0x4c6 PF: > { %p1806_p0 = scmp.ge.s32.totalorder %s1967_s14, 2  ;;  %s1507_s28 = sand.u32 1, %s1947_s30  }
 0x4c7   : > { %s1508_s20 = scalar_lea.sflag [#allocation7], %s1507_s28 }
 0x4c8   : > { %p1803_p1 = pnand %p1806_p0, %p2071_p8 }
 0x4ca   : > { %p1804_p2 = pneg %p1803_p1 }
 0x4cc   : > { %1942 = dma.done.wait (%p1804_p2), %s1508_s20, 128  }
 0x4cd   : > { %1944 = vsyncadd (%p1804_p2), %s1508_s20, 4294967168  ;;  %s22_s14 = sadd.s32 1, %s1967_s14   ;;  %s2328_s30 = smov %s1951_s10 }
 0x4ce   : > { %p19_p3 = scmp.ge.s32.totalorder %s22_s14, 4   ;;  %s2329_s10 = smov %s1955_s11 }
 0x4cf   : > { %s2330_s11 = smov %s2077_s22  ;;  %s2331_s12 = smov %s1963_s13 }
 0x4d0   : > { %s2332_s13 = smov %s2334_s17  ;;  %21 = sbr.rel (!%p19_p3) target bundleno = 4 (0x4), region = 111 }
 0x4d5   :  { %1513 = vsyncpa [#allocation7], 1 }
 0x4d6   :  { %1515 = vsyncpa [#allocation7 + $0x1], 1 }

</bundles_post_ra>
